<compile_context>
chip_gen: v6e
topology: v6e:2x2x1
jax: 0.10.0
libtpu: 0.0.40
codegen_flags: <defaults>
</compile_context>

<pallas_src>
import functools

import jax
import jax.numpy as jnp
from jax import lax
from jax.experimental import pallas as pl
from jax.experimental.pallas import tpu as pltpu

_BN_EPS = 1e-5
_DIST_EPS = 1e-8


def _interp_l0_kernel(nbits, unk_ref, kn_ref, kfeat_ref, ufeat_ref,
                      w0a_ref, w0b_ref, out_ref):
    """three_nn + three_interpolate + first 1x1 conv for one (batch, n-tile)."""
    unk = unk_ref[0]                       # (3, T)  f32  query xyz (lane = point)
    kn = kn_ref[0]                         # (m, 3)  f32  support xyz (sublane = point)
    m = kn.shape[0]
    t = unk.shape[1]

    # --- squared pairwise distances (m, T): pure VPU, no K=3 matmul ---------
    d2 = jnp.zeros((m, t), jnp.float32)
    for d in range(3):
        diff = kn[:, d:d + 1] - unk[d:d + 1, :]       # (m,1)-(1,T) -> (m,T)
        d2 = d2 + diff * diff                         # >= 0 by construction

    # --- top-3 selection, one cross-sublane reduce per round ----------------
    # Pack the support-point index into the low mantissa bits of the
    # non-negative f32 distance; float ordering is preserved, so a single min
    # yields both the minimum distance (low bits truncated) and its argmin.
    low_mask = jnp.int32((1 << nbits) - 1)
    keep_mask = jnp.int32(~((1 << nbits) - 1))
    row = lax.broadcasted_iota(jnp.int32, (m, t), dimension=0)
    work = pltpu.bitcast((pltpu.bitcast(d2, jnp.int32) & keep_mask) | row,
                         jnp.float32)

    wmat = jnp.zeros((m, t), jnp.float32)             # sparse interpolation matrix
    rsum = jnp.zeros((1, t), jnp.float32)
    for _ in range(3):
        kmin = jnp.min(work, axis=0, keepdims=True)   # (1, T): single XLU reduce
        imin = pltpu.bitcast(kmin, jnp.int32)
        sel = imin & low_mask                         # argmin row index
        d2_sel = pltpu.bitcast(imin & keep_mask, jnp.float32)
        # reference semantics: three_nn returns sqrt(dist2); weight = 1/(d+1e-8)
        r = pl.reciprocal(jnp.sqrt(d2_sel) + _DIST_EPS, approx=True)   # EUP
        hit = row == sel                              # (m, T)
        wmat = wmat + jnp.where(hit, r, 0.0)
        rsum = rsum + r
        work = jnp.where(hit, jnp.inf, work)          # exclude for next round

    wn = (wmat * pl.reciprocal(rsum, approx=True)).astype(jnp.bfloat16)

    # --- interpolate + first shared-MLP conv (bias=False): bf16 MXU, f32 acc --
    interp = jnp.dot(kfeat_ref[0], wn,
                     preferred_element_type=jnp.float32)              # (C2, T)
    z = jnp.dot(w0a_ref[...], interp.astype(jnp.bfloat16),
                preferred_element_type=jnp.float32)
    z = z + jnp.dot(w0b_ref[...], ufeat_ref[0],
                    preferred_element_type=jnp.float32)               # (C0, T)
    out_ref[0] = z


def _mlp_bn_kernel(num_layers, batch, npts, x_ref, *refs):
    """Fused BN(+ReLU) for layer 0 plus the remaining conv + BN + ReLU layers."""
    out_ref = refs[-1]
    prefs = refs[:-1]
    inv_cnt = jnp.float32(1.0 / float(batch * npts))

    # (B, C0, n) -> (C0, B*n): batch folded into the lane (point) axis so each
    # layer is one large MXU matmul instead of B small ones.
    x = jnp.concatenate([x_ref[b] for b in range(batch)], axis=-1)

    idx = 0
    for k in range(num_layers):
        if k > 0:
            w = prefs[idx]            # (Ck, Ck-1) bf16
            idx += 1
            x = jnp.dot(w[...], x.astype(jnp.bfloat16),
                        preferred_element_type=jnp.float32)
        gamma = prefs[idx][...]       # (Ck, 1) f32
        idx += 1
        beta = prefs[idx][...]        # (Ck, 1) f32
        idx += 1
        # fused BatchNorm: one stats pass (E[x], E[x^2]) + one FMA/ReLU sweep
        mean = jnp.sum(x, axis=1, keepdims=True) * inv_cnt
        ex2 = jnp.sum(x * x, axis=1, keepdims=True) * inv_cnt
        var = jnp.maximum(ex2 - mean * mean, 0.0)      # biased var (train-mode BN)
        scale = gamma * lax.rsqrt(var + _BN_EPS)
        shift = beta - mean * scale
        x = jnp.maximum(x * scale + shift, 0.0)

    for b in range(batch):                             # lane-dense (c_out, n) stores
        out_ref[b] = x[:, b * npts:(b + 1) * npts]


def _pick_tile(n):
    # Tile of the query-point (lane) axis: multiple of 128, or the full axis.
    for t in (512, 256, 128):
        if n % t == 0:
            return t
    return n


def pointnet_fp_forward(unknown, known, unknow_feats, known_feats, params):
    """PointnetFPModule.forward.

    unknown (B, n, 3), known (B, m, 3), unknow_feats (B, C1, n),
    known_feats (B, C2, m); params = [(W (Cout, Cin), gamma, beta), ...].
    Returns (B, mlp[-1], n).
    """
    # TODO(synk): the `known is None` / `unknow_feats is None` fallback branches
    # of the PyTorch module are not implemented (main propagation path only).
    B, n, _ = unknown.shape
    m = known.shape[1]
    C1 = unknow_feats.shape[1]
    C2 = known_feats.shape[1]
    num_layers = len(params)
    c0 = params[0][0].shape[0]
    c_out = params[-1][0].shape[0]

    T = _pick_tile(n)
    n_tiles = n // T

    # Keep features in their native (B, C, points) layout -> points on lanes
    # end-to-end; only the tiny xyz array is transposed (in the wrapper).
    unk_xyz = jnp.transpose(unknown, (0, 2, 1)).astype(jnp.float32)    # (B, 3, n)
    kn_xyz = known.astype(jnp.float32)                                 # (B, m, 3)
    kfeat = known_feats.astype(jnp.bfloat16)                           # (B, C2, m)
    ufeat = unknow_feats.astype(jnp.bfloat16)                          # (B, C1, n)

    # Concat elimination: split the first conv weight into the interpolated-
    # feature part and the skip-feature part.
    w0 = params[0][0]
    w0a = w0[:, :C2].astype(jnp.bfloat16)                              # (C0, C2)
    w0b = w0[:, C2:].astype(jnp.bfloat16)                              # (C0, C1)

    nbits = max(1, (m - 1).bit_length())   # index bits packed into d2 mantissa

    # Stage 1: three_nn + interpolate + first conv, tiled over (B, n-tiles).
    # TODO(synk): for very large m, replace the dense (m, T) weight matmul with
    # scalar-prefetched sparse m-tiling (PrefetchScalarGridSpec).
    z = pl.pallas_call(
        functools.partial(_interp_l0_kernel, nbits),
        out_shape=jax.ShapeDtypeStruct((B, c0, n), jnp.float32),
        grid=(B, n_tiles),
        in_specs=[
            pl.BlockSpec((1, 3, T), lambda b, i: (b, 0, i)),
            pl.BlockSpec((1, m, 3), lambda b, i: (b, 0, 0)),
            pl.BlockSpec((1, C2, m), lambda b, i: (b, 0, 0)),
            pl.BlockSpec((1, C1, T), lambda b, i: (b, 0, i)),
            pl.BlockSpec((c0, C2), lambda b, i: (0, 0)),
            pl.BlockSpec((c0, C1), lambda b, i: (0, 0)),
        ],
        out_specs=pl.BlockSpec((1, c0, T), lambda b, i: (b, 0, i)),
        compiler_params=pltpu.CompilerParams(
            dimension_semantics=("parallel", "parallel")),
    )(unk_xyz, kn_xyz, kfeat, ufeat, w0a, w0b)

    # Stage 2: BN(+ReLU) and remaining layers. Batch statistics couple all B*n
    # points per layer, so this stage runs as a single program.
    flat_params = [params[0][1].reshape(-1, 1).astype(jnp.float32),
                   params[0][2].reshape(-1, 1).astype(jnp.float32)]
    for (w, g, b) in params[1:]:
        flat_params += [w.astype(jnp.bfloat16),
                        g.reshape(-1, 1).astype(jnp.float32),
                        b.reshape(-1, 1).astype(jnp.float32)]
    inputs2 = [z] + flat_params

    def full_spec(a):
        nd = a.ndim
        return pl.BlockSpec(a.shape, lambda i, _nd=nd: (0,) * _nd)

    out = pl.pallas_call(
        functools.partial(_mlp_bn_kernel, num_layers, B, n),
        out_shape=jax.ShapeDtypeStruct((B, c_out, n), jnp.float32),
        grid=(1,),
        in_specs=[full_spec(a) for a in inputs2],
        out_specs=pl.BlockSpec((B, c_out, n), lambda i: (0, 0, 0)),
    )(*inputs2)
    return out                                      # (B, mlp[-1], n), no transpose


if __name__ == "__main__":
    key = jax.random.PRNGKey(0)
    B, n, m = 2, 64, 16
    C1, C2 = 6, 10
    mlp = [C1 + C2, 32, 32]

    ks = jax.random.split(key, 5)
    unknown = jax.random.normal(ks[0], (B, n, 3), jnp.float32)
    known = jax.random.normal(ks[1], (B, m, 3), jnp.float32)
    unknow_feats = jax.random.normal(ks[2], (B, C1, n), jnp.float32)
    known_feats = jax.random.normal(ks[3], (B, C2, m), jnp.float32)

    # Deterministic synthetic parameters (Conv2d 1x1 weight + BN affine params).
    params = []
    pkeys = jax.random.split(ks[4], len(mlp) - 1)
    for k in range(len(mlp) - 1):
        fan_in = mlp[k]
        W = jax.random.normal(pkeys[k], (mlp[k + 1], mlp[k]), jnp.float32) / jnp.sqrt(fan_in)
        gamma = jnp.ones((mlp[k + 1],), jnp.float32)
        beta = jnp.zeros((mlp[k + 1],), jnp.float32)
        params.append((W, gamma, beta))

    out = pointnet_fp_forward(unknown, known, unknow_feats, known_feats, params)
    out = jax.block_until_ready(out)
    assert out.shape == (B, mlp[-1], n), out.shape
    assert bool(jnp.all(jnp.isfinite(out)))
    print("KERNEL_OK")
</pallas_src>

<mosaic_0001>
module attributes {stable_mosaic.version = 11 : i64} {
  func.func @_interp_l0_kernel(%arg0: i32, %arg1: i32, %arg2: memref<1x3x64xf32, #tpu.memory_space<vmem>>, %arg3: memref<1x16x3xf32, #tpu.memory_space<vmem>>, %arg4: memref<1x10x16xbf16, #tpu.memory_space<vmem>>, %arg5: memref<1x6x64xbf16, #tpu.memory_space<vmem>>, %arg6: memref<32x10xbf16, #tpu.memory_space<vmem>>, %arg7: memref<32x6xbf16, #tpu.memory_space<vmem>>, %arg8: memref<1x32x64xf32, #tpu.memory_space<vmem>>) attributes {dimension_semantics = [#tpu.dimension_semantics<parallel>, #tpu.dimension_semantics<parallel>], iteration_bounds = array<i64: 2, 1>, scalar_prefetch = 0 : i64, scratch_operands = 0 : i64, tpu.core_type = #tpu.core_type<tc>, window_params = [{transform_indices = @transform_0, window_bounds = array<i64: 1, 3, 64>}, {transform_indices = @transform_1, window_bounds = array<i64: 1, 16, 3>}, {transform_indices = @transform_2, window_bounds = array<i64: 1, 10, 16>}, {transform_indices = @transform_3, window_bounds = array<i64: 1, 6, 64>}, {pipeline_mode = #tpu.pipeline_mode<synchronous>, transform_indices = @transform_4, window_bounds = array<i64: 32, 10>}, {pipeline_mode = #tpu.pipeline_mode<synchronous>, transform_indices = @transform_5, window_bounds = array<i64: 32, 6>}, {transform_indices = @transform_6, window_bounds = array<i64: 1, 32, 64>}]} {
    %c0 = arith.constant 0 : index
    %c0_0 = arith.constant 0 : index
    %c0_1 = arith.constant 0 : index
    %0 = vector.load %arg2[%c0, %c0_0, %c0_1] : memref<1x3x64xf32, #tpu.memory_space<vmem>>, vector<1x3x64xf32>
    %1 = vector.shape_cast %0 : vector<1x3x64xf32> to vector<3x64xf32>
    %c0_2 = arith.constant 0 : index
    %c0_3 = arith.constant 0 : index
    %c0_4 = arith.constant 0 : index
    %2 = vector.load %arg3[%c0_2, %c0_3, %c0_4] : memref<1x16x3xf32, #tpu.memory_space<vmem>>, vector<1x16x3xf32>
    %3 = vector.shape_cast %2 : vector<1x16x3xf32> to vector<16x3xf32>
    %cst = arith.constant 0.000000e+00 : f32
    %4 = vector.broadcast %cst : f32 to vector<16x64xf32>
    %5 = vector.extract_strided_slice %3 {offsets = [0, 0], sizes = [16, 1], strides = [1, 1]} : vector<16x3xf32> to vector<16x1xf32>
    %6 = vector.extract_strided_slice %1 {offsets = [0, 0], sizes = [1, 64], strides = [1, 1]} : vector<3x64xf32> to vector<1x64xf32>
    %7 = vector.broadcast %5 : vector<16x1xf32> to vector<16x64xf32>
    %8 = vector.broadcast %6 : vector<1x64xf32> to vector<16x64xf32>
    %9 = arith.subf %7, %8 : vector<16x64xf32>
    %10 = arith.mulf %9, %9 : vector<16x64xf32>
    %11 = arith.addf %4, %10 : vector<16x64xf32>
    %12 = vector.extract_strided_slice %3 {offsets = [0, 1], sizes = [16, 1], strides = [1, 1]} : vector<16x3xf32> to vector<16x1xf32>
    %13 = vector.extract_strided_slice %1 {offsets = [1, 0], sizes = [1, 64], strides = [1, 1]} : vector<3x64xf32> to vector<1x64xf32>
    %14 = vector.broadcast %12 : vector<16x1xf32> to vector<16x64xf32>
    %15 = vector.broadcast %13 : vector<1x64xf32> to vector<16x64xf32>
    %16 = arith.subf %14, %15 : vector<16x64xf32>
    %17 = arith.mulf %16, %16 : vector<16x64xf32>
    %18 = arith.addf %11, %17 : vector<16x64xf32>
    %19 = vector.extract_strided_slice %3 {offsets = [0, 2], sizes = [16, 1], strides = [1, 1]} : vector<16x3xf32> to vector<16x1xf32>
    %20 = vector.extract_strided_slice %1 {offsets = [2, 0], sizes = [1, 64], strides = [1, 1]} : vector<3x64xf32> to vector<1x64xf32>
    %21 = vector.broadcast %19 : vector<16x1xf32> to vector<16x64xf32>
    %22 = vector.broadcast %20 : vector<1x64xf32> to vector<16x64xf32>
    %23 = arith.subf %21, %22 : vector<16x64xf32>
    %24 = arith.mulf %23, %23 : vector<16x64xf32>
    %25 = arith.addf %18, %24 : vector<16x64xf32>
    %26 = tpu.iota {dimensions = array<i32: 0>} : vector<16x64xi32>
    %27 = tpu.bitcast %25 : vector<16x64xf32> -> vector<16x64xi32>
    %c-16_i32 = arith.constant -16 : i32
    %28 = vector.broadcast %c-16_i32 : i32 to vector<16x64xi32>
    %29 = arith.andi %27, %28 : vector<16x64xi32>
    %30 = arith.ori %29, %26 : vector<16x64xi32>
    %31 = tpu.bitcast %30 : vector<16x64xi32> -> vector<16x64xf32>
    %cst_5 = arith.constant 0.000000e+00 : f32
    %32 = vector.broadcast %cst_5 : f32 to vector<16x64xf32>
    %cst_6 = arith.constant 0.000000e+00 : f32
    %33 = vector.broadcast %cst_6 : f32 to vector<1x64xf32>
    %cst_7 = arith.constant dense<0x7F800000> : vector<64xf32>
    %34 = vector.multi_reduction <minimumf>, %31, %cst_7 [0] : vector<16x64xf32> to vector<64xf32>
    %35 = vector.shape_cast %34 : vector<64xf32> to vector<1x64xf32>
    %36 = tpu.bitcast %35 : vector<1x64xf32> -> vector<1x64xi32>
    %c15_i32 = arith.constant 15 : i32
    %37 = vector.broadcast %c15_i32 : i32 to vector<1x64xi32>
    %38 = arith.andi %36, %37 : vector<1x64xi32>
    %c-16_i32_8 = arith.constant -16 : i32
    %39 = vector.broadcast %c-16_i32_8 : i32 to vector<1x64xi32>
    %40 = arith.andi %36, %39 : vector<1x64xi32>
    %41 = tpu.bitcast %40 : vector<1x64xi32> -> vector<1x64xf32>
    %42 = math.sqrt %41 : vector<1x64xf32>
    %cst_9 = arith.constant 9.99999993E-9 : f32
    %43 = vector.broadcast %cst_9 : f32 to vector<1x64xf32>
    %44 = arith.addf %42, %43 : vector<1x64xf32>
    %45 = tpu.reciprocal %44 {approx = true} : vector<1x64xf32> -> vector<1x64xf32>
    %46 = vector.broadcast %38 : vector<1x64xi32> to vector<16x64xi32>
    %47 = arith.cmpi eq, %26, %46 : vector<16x64xi32>
    %cst_10 = arith.constant 0.000000e+00 : f32
    %48 = vector.shape_cast %45 : vector<1x64xf32> to vector<1x64xf32>
    %49 = vector.broadcast %48 : vector<1x64xf32> to vector<16x64xf32>
    %50 = vector.broadcast %cst_10 : f32 to vector<16x64xf32>
    %51 = arith.select %47, %49, %50 : vector<16x64xi1>, vector<16x64xf32>
    %52 = arith.addf %32, %51 : vector<16x64xf32>
    %53 = arith.addf %33, %45 : vector<1x64xf32>
    %cst_11 = arith.constant 0x7F800000 : f32
    %54 = vector.broadcast %cst_11 : f32 to vector<16x64xf32>
    %55 = arith.select %47, %54, %31 : vector<16x64xi1>, vector<16x64xf32>
    %cst_12 = arith.constant dense<0x7F800000> : vector<64xf32>
    %56 = vector.multi_reduction <minimumf>, %55, %cst_12 [0] : vector<16x64xf32> to vector<64xf32>
    %57 = vector.shape_cast %56 : vector<64xf32> to vector<1x64xf32>
    %58 = tpu.bitcast %57 : vector<1x64xf32> -> vector<1x64xi32>
    %c15_i32_13 = arith.constant 15 : i32
    %59 = vector.broadcast %c15_i32_13 : i32 to vector<1x64xi32>
    %60 = arith.andi %58, %59 : vector<1x64xi32>
    %c-16_i32_14 = arith.constant -16 : i32
    %61 = vector.broadcast %c-16_i32_14 : i32 to vector<1x64xi32>
    %62 = arith.andi %58, %61 : vector<1x64xi32>
    %63 = tpu.bitcast %62 : vector<1x64xi32> -> vector<1x64xf32>
    %64 = math.sqrt %63 : vector<1x64xf32>
    %cst_15 = arith.constant 9.99999993E-9 : f32
    %65 = vector.broadcast %cst_15 : f32 to vector<1x64xf32>
    %66 = arith.addf %64, %65 : vector<1x64xf32>
    %67 = tpu.reciprocal %66 {approx = true} : vector<1x64xf32> -> vector<1x64xf32>
    %68 = vector.broadcast %60 : vector<1x64xi32> to vector<16x64xi32>
    %69 = arith.cmpi eq, %26, %68 : vector<16x64xi32>
    %cst_16 = arith.constant 0.000000e+00 : f32
    %70 = vector.shape_cast %67 : vector<1x64xf32> to vector<1x64xf32>
    %71 = vector.broadcast %70 : vector<1x64xf32> to vector<16x64xf32>
    %72 = vector.broadcast %cst_16 : f32 to vector<16x64xf32>
    %73 = arith.select %69, %71, %72 : vector<16x64xi1>, vector<16x64xf32>
    %74 = arith.addf %52, %73 : vector<16x64xf32>
    %75 = arith.addf %53, %67 : vector<1x64xf32>
    %cst_17 = arith.constant 0x7F800000 : f32
    %76 = vector.broadcast %cst_17 : f32 to vector<16x64xf32>
    %77 = arith.select %69, %76, %55 : vector<16x64xi1>, vector<16x64xf32>
    %cst_18 = arith.constant dense<0x7F800000> : vector<64xf32>
    %78 = vector.multi_reduction <minimumf>, %77, %cst_18 [0] : vector<16x64xf32> to vector<64xf32>
    %79 = vector.shape_cast %78 : vector<64xf32> to vector<1x64xf32>
    %80 = tpu.bitcast %79 : vector<1x64xf32> -> vector<1x64xi32>
    %c15_i32_19 = arith.constant 15 : i32
    %81 = vector.broadcast %c15_i32_19 : i32 to vector<1x64xi32>
    %82 = arith.andi %80, %81 : vector<1x64xi32>
    %c-16_i32_20 = arith.constant -16 : i32
    %83 = vector.broadcast %c-16_i32_20 : i32 to vector<1x64xi32>
    %84 = arith.andi %80, %83 : vector<1x64xi32>
    %85 = tpu.bitcast %84 : vector<1x64xi32> -> vector<1x64xf32>
    %86 = math.sqrt %85 : vector<1x64xf32>
    %cst_21 = arith.constant 9.99999993E-9 : f32
    %87 = vector.broadcast %cst_21 : f32 to vector<1x64xf32>
    %88 = arith.addf %86, %87 : vector<1x64xf32>
    %89 = tpu.reciprocal %88 {approx = true} : vector<1x64xf32> -> vector<1x64xf32>
    %90 = vector.broadcast %82 : vector<1x64xi32> to vector<16x64xi32>
    %91 = arith.cmpi eq, %26, %90 : vector<16x64xi32>
    %cst_22 = arith.constant 0.000000e+00 : f32
    %92 = vector.shape_cast %89 : vector<1x64xf32> to vector<1x64xf32>
    %93 = vector.broadcast %92 : vector<1x64xf32> to vector<16x64xf32>
    %94 = vector.broadcast %cst_22 : f32 to vector<16x64xf32>
    %95 = arith.select %91, %93, %94 : vector<16x64xi1>, vector<16x64xf32>
    %96 = arith.addf %74, %95 : vector<16x64xf32>
    %97 = arith.addf %75, %89 : vector<1x64xf32>
    %98 = tpu.reciprocal %97 {approx = true} : vector<1x64xf32> -> vector<1x64xf32>
    %99 = vector.broadcast %98 : vector<1x64xf32> to vector<16x64xf32>
    %100 = arith.mulf %96, %99 : vector<16x64xf32>
    %101 = arith.truncf %100 : vector<16x64xf32> to vector<16x64xbf16>
    %c0_23 = arith.constant 0 : index
    %c0_24 = arith.constant 0 : index
    %c0_25 = arith.constant 0 : index
    %102 = vector.load %arg4[%c0_23, %c0_24, %c0_25] : memref<1x10x16xbf16, #tpu.memory_space<vmem>>, vector<1x10x16xbf16>
    %103 = vector.shape_cast %102 : vector<1x10x16xbf16> to vector<10x16xbf16>
    %cst_26 = arith.constant dense<0.000000e+00> : vector<10x64xf32>
    %104 = tpu.matmul %103, %101, %cst_26 {dimension_numbers = #tpu.dot_dimension_numbers<[1], [0], [0], [1], [0, 0, 1, 1], [], []>} : vector<10x16xbf16>, vector<16x64xbf16>, vector<10x64xf32> -> vector<10x64xf32>
    %c0_27 = arith.constant 0 : index
    %c0_28 = arith.constant 0 : index
    %105 = vector.load %arg6[%c0_27, %c0_28] : memref<32x10xbf16, #tpu.memory_space<vmem>>, vector<32x10xbf16>
    %106 = arith.truncf %104 : vector<10x64xf32> to vector<10x64xbf16>
    %cst_29 = arith.constant dense<0.000000e+00> : vector<32x64xf32>
    %107 = tpu.matmul %105, %106, %cst_29 {dimension_numbers = #tpu.dot_dimension_numbers<[1], [0], [0], [1], [0, 0, 1, 1], [], []>} : vector<32x10xbf16>, vector<10x64xbf16>, vector<32x64xf32> -> vector<32x64xf32>
    %c0_30 = arith.constant 0 : index
    %c0_31 = arith.constant 0 : index
    %108 = vector.load %arg7[%c0_30, %c0_31] : memref<32x6xbf16, #tpu.memory_space<vmem>>, vector<32x6xbf16>
    %c0_32 = arith.constant 0 : index
    %c0_33 = arith.constant 0 : index
    %c0_34 = arith.constant 0 : index
    %109 = vector.load %arg5[%c0_32, %c0_33, %c0_34] : memref<1x6x64xbf16, #tpu.memory_space<vmem>>, vector<1x6x64xbf16>
    %110 = vector.shape_cast %109 : vector<1x6x64xbf16> to vector<6x64xbf16>
    %cst_35 = arith.constant dense<0.000000e+00> : vector<32x64xf32>
    %111 = tpu.matmul %108, %110, %cst_35 {dimension_numbers = #tpu.dot_dimension_numbers<[1], [0], [0], [1], [0, 0, 1, 1], [], []>} : vector<32x6xbf16>, vector<6x64xbf16>, vector<32x64xf32> -> vector<32x64xf32>
    %112 = arith.addf %107, %111 : vector<32x64xf32>
    %c0_36 = arith.constant 0 : index
    %c0_37 = arith.constant 0 : index
    %c0_38 = arith.constant 0 : index
    %113 = vector.load %arg8[%c0_36, %c0_37, %c0_38] : memref<1x32x64xf32, #tpu.memory_space<vmem>>, vector<1x32x64xf32>
    %114 = vector.shape_cast %113 : vector<1x32x64xf32> to vector<32x64xf32>
    %115 = vector.shape_cast %112 : vector<32x64xf32> to vector<1x32x64xf32>
    tpu.vector_store %arg8[%c0_36, %c0_37, %c0_38], %115 {strides = array<i32>} : memref<1x32x64xf32, #tpu.memory_space<vmem>>, vector<1x32x64xf32>,
    return
  }
  func.func @transform_0(%arg0: i32, %arg1: i32) -> (i32, i32, i32) {
    %c0_i32 = arith.constant 0 : i32
    %c0_i32_0 = arith.constant 0 : i32
    return %arg0, %c0_i32, %arg1 : i32, i32, i32
  }
  func.func @transform_1(%arg0: i32, %arg1: i32) -> (i32, i32, i32) {
    %c0_i32 = arith.constant 0 : i32
    %c0_i32_0 = arith.constant 0 : i32
    %c0_i32_1 = arith.constant 0 : i32
    return %arg0, %c0_i32, %c0_i32_0 : i32, i32, i32
  }
  func.func @transform_2(%arg0: i32, %arg1: i32) -> (i32, i32, i32) {
    %c0_i32 = arith.constant 0 : i32
    %c0_i32_0 = arith.constant 0 : i32
    %c0_i32_1 = arith.constant 0 : i32
    return %arg0, %c0_i32, %c0_i32_0 : i32, i32, i32
  }
  func.func @transform_3(%arg0: i32, %arg1: i32) -> (i32, i32, i32) {
    %c0_i32 = arith.constant 0 : i32
    %c0_i32_0 = arith.constant 0 : i32
    return %arg0, %c0_i32, %arg1 : i32, i32, i32
  }
  func.func @transform_4(%arg0: i32, %arg1: i32) -> (i32, i32) {
    %c0_i32 = arith.constant 0 : i32
    %c0_i32_0 = arith.constant 0 : i32
    %c0_i32_1 = arith.constant 0 : i32
    return %c0_i32, %c0_i32_0 : i32, i32
  }
  func.func @transform_5(%arg0: i32, %arg1: i32) -> (i32, i32) {
    %c0_i32 = arith.constant 0 : i32
    %c0_i32_0 = arith.constant 0 : i32
    %c0_i32_1 = arith.constant 0 : i32
    return %c0_i32, %c0_i32_0 : i32, i32
  }
  func.func @transform_6(%arg0: i32, %arg1: i32) -> (i32, i32, i32) {
    %c0_i32 = arith.constant 0 : i32
    %c0_i32_0 = arith.constant 0 : i32
    return %arg0, %c0_i32, %arg1 : i32, i32, i32
  }
}

</mosaic_0001>

<bundles_post_ra>
// kernel: tpu_custom_call.1
= control target key start
LH: loop header
LB: loop body
LE: loop exit
PB: predicated region body
PF: predicated region fallthrough
CT: control target
= control target key end

     0   :  { %11 = vsyncpa [#allocation3], 0  ;;  %s1311_s0 = inlined_call_operand.vmem [shape: f32[2,3,64], index: 0, kind: input, shape index: {}]   ;;  %s1312_s1 = inlined_call_operand.vmem [shape: f32[2,16,3], index: 1, kind: input, shape index: {}]   ;;  %s1313_s2 = inlined_call_operand.vmem [shape: bf16[2,10,16], index: 2, kind: input, shape index: {}]   ;;  %s1314_s3 = inlined_call_operand.vmem [shape: bf16[2,6,64], index: 3, kind: input, shape index: {}]   ;;  %s1315_s4 = inlined_call_operand.vmem [shape: bf16[32,10], index: 4, kind: input, shape index: {}]   ;;  %s1316_s5 = inlined_call_operand.vmem [shape: bf16[32,6], index: 5, kind: input, shape index: {}]   ;;  %s1317_s6 = inlined_call_operand.hbm [shape: f32[2,32,64], index: 6, kind: output, shape index: {}]  }
   0x1   :  { %13 = vsyncpa [#allocation3 + $0x1], 0  ;;  %s1106_s21 = smov 0   ;;  %s1108_s22 = smov 0  }
   0x2   :  { %s1110_s23 = smov 0   ;;  %s1112_s24 = smov 0  }
   0x3   :  { %s1114_s25 = smov 0   ;;  %s1116_s26 = smov 0  }
   0x4 LB: > { %s842_s27 = sadd.s32 4294967295, %s1061_s26   ;;  %s843_s28 = sadd.s32 4294967294, %s1061_s26   ;;  %s1061_s26 = sphi %s1116_s26, %s19_s26   ;;  %s1057_s25 = sphi %s1114_s25, %s1332_s25   ;;  %s1053_s24 = sphi %s1112_s24, %s1331_s24   ;;  %s1049_s23 = sphi %s1110_s23, %s1330_s23   ;;  %s1045_s22 = sphi %s1108_s22, %s1329_s22   ;;  %s1041_s21 = sphi %s1106_s21, %s1328_s21  }
   0x5   : > { %s31_s29 = sadd.s32 1, %s1057_s25  ;;  %s190_s30 = sadd.s32 1, %s1049_s23 }
   0x6   : > { %p33_p0 = scmp.ge.s32.totalorder %s31_s29, 2  ;;  %p200_p1 = scmp.ne.s32.totalorder %s1049_s23, %s1045_s22 }
   0x7   : > { %p201_p2 = scmp.eq.s32.totalorder %s842_s27, 1  ;;  %p206_p3 = scmp.ne.s32.totalorder %s1045_s22, %s1041_s21 }
   0x8   : > { %s1334_s29 = smov (%p33_p0, %s31_s29), 0  ;;  %p207_p5 = scmp.eq.s32.totalorder %s843_s28, 1 }
   0x9   : > { %p1146_p4 = por %p201_p2, %p200_p1  ;;  %s185_s8 = ssub.s32 %s1057_s25, %s1334_s29 }
   0xa   : > { %p846_p6 = scmp.ge.s32.totalorder %s1061_s26, 1  ;;  %p188_p7 = scmp.eq.s32.totalorder %s185_s8, 0 }
   0xb   : > { %p1153_p8 = por %p207_p5, %p206_p3  ;;  %p267_p9 = scmp.lt.s32.totalorder %s1061_s26, 3 }
   0xc   : > { %s1159_s10 = scalar_select %p188_p7, %s1049_s23, %s190_s30  }
   0xd   : > { %p268_p10 = pnand %p846_p6, %p267_p9 }
   0xe   : > { %p316_p11 = scmp.lt.s32.totalorder (!%p268_p10), %s1053_s24, 1  ;;  %s313_s27 = sand.u32 (!%p268_p10), 1, %s1045_s22  }
   0xf   : > { %271 = sbr.rel (%p268_p10) target bundleno = 698 (0x2ba), region = 44  ;;  %s847_s28 = sshll.u32 (!%p268_p10), %s313_s27, 5 }
  0x10   : > { %s1068_s18 = smov (!%p268_p10), [#allocation2]  }
  0x14   : > { %v1063_v0 = vmov 1   ;;  %v1064_v1 = vmov 0   ;;  %s1163_s11 = scalar_select %p316_p11, %s1053_s24, 1  ;;  %v1065_v4 = vmov 2   ;;  %v1066_v5 = vmov 0.0  }
  0x15   : > { %963 = vset.pattern.permute.xlu1 %v1063_v0  ;;  %962 = vset.pattern.permute.xlu0 %v1064_v1  ;;  %v354_v6 = vlaneseq  ;;  %vm1067_vm0 = vmmov 0   ;;  %vm411_vm1 = vcmask 523264   ;;  %vm514_vm14 = vcmask 130048  }
  0x16   : > { %s869_s12 = sshll.u32 %s1163_s11, 4  ;;  %880 = vmatprep.subr.bf16.mxu0 %v1066_v5  ;;  %s848_s16 = sshll.u32 %s1163_s11, 2  ;;  %882 = vmatprep.mubr.msk.bf16.mxu0 %vm1067_vm0, %v1066_v5  ;;  %vm586_vm15 = vcmask 1042432   ;;  %vm579_vm0 = vcmask 48128  }
  0x17   : > { %s327_s15 = scalar_lea.vmem %s1312_s1, %s869_s12  ;;  %v1170_v7 = vshrl.u32 %v354_v6, 7  ;;  %s322_s19 = scalar_lea.vmem %s1311_s0, %s848_s16 }
  0x18   : > { %v342_v2 = vld [vmem:[%s327_s15] sm:$0xff]  ;;  %v343_v3 = vld [vmem:[%s327_s15 + $0x8] sm:$0xff]  ;;  %s870_s20 = sshll.u32 %s1163_s11, 3  ;;  %s339_s13 = scalar_lea.vmem %s1314_s3, %s848_s16 }
  0x19   : > { %365 = vperm.xlu1 %963, %v342_v2   ;;  %346 = vperm.xlu0 %962, %v342_v2   ;;  %v374_v8 = vsub.s32 1, %v1170_v7  ;;  %v356_v9 = vsub.s32 0, %v1170_v7  ;;  %v341_v10 = vld [vmem:[%s322_s19] sm:$0x7]  ;;  %v392_v15 = vsub.s32 2, %v1170_v7  ;;  %s1184_s30 = scalar_lea.vmem %s1313_s2, %s870_s20  ;;  %v1187_v35 = vadd.s32 8, %v1170_v7 }
  0x1a   : > { %s871_s12 = sshll.u32 %s1053_s24, 9  ;;  %s1266_s24 = scalar_lea.sflag [#allocation3], %s313_s27 }
  0x1b   : > { %v375_v12 = vrot.slane %v341_v10, %v374_v8  ;;  %v357_v14 = vrot.slane %v341_v10, %v356_v9  ;;  %v393_v22 = vrot.slane %v341_v10, %v392_v15  ;;  %s1263_s15 = scalar_lea.hbm %s1317_s6, %s871_s12  ;;  %s989_s11 = sshll.u32 %s1068_s18, 4  ;;  %s990_s11 = int_to_ptr.vmem [resolvable:$false] %s989_s11 }
  0x1c   : > { %s991_s19 = scalar_lea.vmem %s990_s11, 1024 }
  0x1d   : > { %369 = vperm.xlu1 %963, %v343_v3   ;;  %351 = vperm.xlu0 %962, %v343_v3  }
  0x21   : > { %965 = vset.pattern.permute.xlu1 %v1065_v4  ;;  %964 = vset.pattern.permute.xlu0 %v1065_v4  ;;  %v970_v4 = vld [vmem:[%s1315_s4 + $0x8] sm:$0xff]  }
  0x22   : > { %387 = vperm.xlu1 %965, %v343_v3   ;;  %383 = vperm.xlu0 %964, %v342_v2  }
  0x94   : > { %v366_v11 = vpop.permute.xlu1 %365  ;;  %v347_v13 = vpop.permute.xlu0 %346 }
  0x95   : > { %v376_v16 = vsub.f32 %v366_v11, %v375_v12  ;;  %v358_v17 = vsub.f32 %v347_v13, %v357_v14 }
  0x97   : > { %v378_v23 = vmul.f32 %v376_v16, %v376_v16  ;;  %v360_v24 = vmul.f32 %v358_v17, %v358_v17 }
  0x98   : > { %v370_v18 = vpop.permute.xlu1 %369  ;;  %v352_v19 = vpop.permute.xlu0 %351 }
  0x99   : > { %v377_v20 = vsub.f32 %v370_v18, %v375_v12  ;;  %v359_v21 = vsub.f32 %v352_v19, %v357_v14  ;;  %v380_v31 = vadd.f32 %v378_v23, %v360_v24 }
  0x9b   : > { %v379_v25 = vmul.f32 %v377_v20, %v377_v20  ;;  %v361_v26 = vmul.f32 %v359_v21, %v359_v21 }
  0x9d   : > { %v388_v27 = vpop.permute.xlu1 %387  ;;  %v384_v28 = vpop.permute.xlu0 %383  ;;  %v381_v32 = vadd.f32 %v379_v25, %v361_v26 }
  0x9e   : > { %v395_v29 = vsub.f32 %v388_v27, %v393_v22  ;;  %v394_v30 = vsub.f32 %v384_v28, %v393_v22 }
  0xa0   : > { %v397_v33 = vmul.f32 %v395_v29, %v395_v29  ;;  %v396_v34 = vmul.f32 %v394_v30, %v394_v30 }
  0xa2   : > { %v399_v36 = vadd.f32 %v397_v33, %v381_v32  ;;  %v398_v37 = vadd.f32 %v396_v34, %v380_v31 }
  0xa4   : > { %v406_v38 = vand.u32 4294967280, %v399_v36  ;;  %v405_v39 = vand.u32 4294967280, %v398_v37 }
  0xa6   : > { %v408_v40 = vor.u32 %v406_v38, %v1187_v35  ;;  %v407_v41 = vor.u32 %v405_v39, %v1170_v7 }
  0xa8   : > { %v413_v42 = vsel %vm411_vm1, %v408_v40, inf  ;;  %v412_v43 = vsel %vm411_vm1, %v407_v41, inf }
  0xa9   : > { %v414_v44 = vmin.f32 %v412_v43, %v413_v42 }
  0xab   : > { %v415_v45 = vrot.slane %v414_v44, 4 }
  0xad   : > { %v416_v46 = vmin.f32 %v414_v44, %v415_v45 }
  0xaf   : > { %v417_v47 = vrot.slane %v416_v46, 2 }
  0xb1   : > { %v418_v48 = vmin.f32 %v416_v46, %v417_v47 }
  0xb3   : > { %v419_v49 = vrot.slane %v418_v48, 1 }
  0xb5   : > { %v420_v50 = vmin.f32 %v418_v48, %v419_v49 }
  0xb7   : > { %v422_v51 = vand.u32 15, %v420_v50  ;;  %v423_v5 = vand.u32 4294967280, %v420_v50 }
  0xb9   : > { %vm1194_vm2 = vcmp.eq.s32.totalorder %v1170_v7, %v422_v51  ;;  %vm1199_vm3 = vcmp.eq.s32.totalorder %v1187_v35, %v422_v51  ;;  %vm427_vm7 = vcmp.eq.f32.partialorder %v423_v5, inf  ;;  %v430_v26 = vand.u32 2147483648, %v423_v5 }
  0xba   : > { %v441_v54 = vsel %vm1194_vm2, inf, %v407_v41  ;;  %v442_v55 = vsel %vm1199_vm3, inf, %v408_v40  ;;  %vm429_vm9 = vcmp.eq.f32.partialorder %v423_v5, 0.0 }
  0xbb   : > { %v443_v56 = vsel %vm411_vm1, %v441_v54, inf  ;;  %v444_v57 = vsel %vm411_vm1, %v442_v55, inf }
  0xbc   : > { %v445_v58 = vmin.f32 %v443_v56, %v444_v57 }
  0xbe   : > { %v446_v59 = vrot.slane %v445_v58, 4 }
  0xc0   : > { %v447_v60 = vmin.f32 %v445_v58, %v446_v59  ;;  %v966_v58 = vld [vmem:[%s1184_s30] sm:$0x1f]   ;;  %s315_s30 = scalar_lea.vmem [#allocation2], %s847_s28 }
  0xc1   : > { %v967_v59 = vld [vmem:[%s1316_s5] sm:$0xff]   ;;  %s728_s8 = sshll.u32 %s315_s30, 4  ;;  %s1257_s8 = int_to_ptr.vmem [resolvable:$true] %s728_s8 }
  0xc2   : > { %v448_v61 = vrot.slane %v447_v60, 2  ;;  %888 = vmatprep.mubr.msk.bf16.mxu1 %vm579_vm0, %v967_v59  ;;  %s985_s17 = scalar_lea.vmem %s1257_s8, 512  ;;  %p992_p1 = scmp.lt.s32.totalorder %s1257_s8, %s990_s11 }
  0xc3   : > { %p986_p12 = scmp.ne.s32.totalorder %s1257_s8, %s985_s17  ;;  %p993_p2 = scmp.lt.s32.totalorder %s991_s19, %s985_s17 }
  0xc4   : > { %v449_v62 = vmin.f32 %v447_v60, %v448_v61  ;;  %v968_v60 = vld [vmem:[%s1316_s5 + $0x8] sm:$0xff]   ;;  %v969_v61 = vld [vmem:[%s1315_s4] sm:$0xff]  }
  0xc5   : > { %p987_p13 = pnand %p986_p12, %p1146_p4  ;;  %p994_p3 = por %p993_p2, %p992_p1 }
  0xc6   : > { %v450_v63 = vrot.slane %v449_v62, 1 }
  0xc7   : > { %p988_p0 = pneg %p987_p13 }
  0xc8   : > { %v451_v0 = vmin.f32 %v449_v62, %v450_v63 }
  0xc9   : > { %p995_p5 = pnand %p994_p3, %p988_p0 }
  0xca   : > { %v453_v1 = vand.u32 15, %v451_v0  ;;  %v454_v2 = vand.u32 4294967280, %v451_v0 }
  0xcc   : > { %vm1210_vm4 = vcmp.eq.s32.totalorder %v1170_v7, %v453_v1  ;;  %vm1215_vm5 = vcmp.eq.s32.totalorder %v1187_v35, %v453_v1  ;;  %971 = vrsqrt.f32 %v454_v2  ;;  %vm458_vm6 = vcmp.eq.f32.partialorder %v454_v2, inf }
  0xcd   : > { %v472_v6 = vsel %vm1210_vm4, inf, %v441_v54  ;;  %v473_v8 = vsel %vm1215_vm5, inf, %v442_v55  ;;  %973 = vrsqrt.f32 %v423_v5  ;;  %v461_v24 = vand.u32 2147483648, %v454_v2 }
  0xce   : > { %v474_v9 = vsel %vm411_vm1, %v472_v6, inf  ;;  %v475_v10 = vsel %vm411_vm1, %v473_v8, inf  ;;  %vm460_vm8 = vcmp.eq.f32.partialorder %v454_v2, 0.0 }
  0xcf   : > { %v476_v11 = vmin.f32 %v474_v9, %v475_v10 }
  0xd1   : > { %v477_v12 = vrot.slane %v476_v11, 4 }
  0xd3   : > { %v478_v13 = vmin.f32 %v476_v11, %v477_v12 }
  0xd5   : > { %v479_v14 = vrot.slane %v478_v13, 2 }
  0xd7   : > { %v480_v15 = vmin.f32 %v478_v13, %v479_v14 }
  0xd9   : > { %v481_v16 = vrot.slane %v480_v15, 1  ;;  %v972_v18 = vpop.eup %971 }
  0xda   : > { %v974_v20 = vpop.eup %973  ;;  %v457_v21 = vmul.f32 %v972_v18, %v454_v2 }
  0xdb   : > { %v482_v17 = vmin.f32 %v480_v15, %v481_v16  ;;  %v426_v22 = vmul.f32 %v974_v20, %v423_v5 }
  0xdc   : > { %v459_v23 = vsel %vm458_vm6, %v454_v2, %v457_v21 }
  0xdd   : > { %v485_v19 = vand.u32 4294967280, %v482_v17  ;;  %v428_v25 = vsel %vm427_vm7, %v423_v5, %v426_v22  ;;  %v462_v27 = vsel %vm460_vm8, %v461_v24, %v459_v23  ;;  %v484_v40 = vand.u32 15, %v482_v17 }
  0xde   : > { %v431_v28 = vsel %vm429_vm9, %v430_v26, %v428_v25  ;;  %v463_v29 = vadd.f32 1e-08, %v462_v27 }
  0xdf   : > { %975 = vrsqrt.f32 %v485_v19  ;;  %v432_v30 = vadd.f32 1e-08, %v431_v28  ;;  %vm489_vm10 = vcmp.eq.f32.partialorder %v485_v19, inf  ;;  %v492_v33 = vand.u32 2147483648, %v485_v19 }
  0xe0   : > { %977 = vrcp.f32 %v463_v29  ;;  %vm491_vm11 = vcmp.eq.f32.partialorder %v485_v19, 0.0  ;;  %vm497_vm12 = vcmp.eq.s32.totalorder %v1187_v35, %v484_v40  ;;  %vm496_vm13 = vcmp.eq.s32.totalorder %v1170_v7, %v484_v40  ;;  %v568_v7 = vld [vmem:[%s339_s13] sm:$0x7] }
  0xe1   : > { %979 = vrcp.f32 %v432_v30  ;;  %898 = vmatprep.subr.msk.bf16.mxu1 %vm586_vm15, %v568_v7  ;;  %v588_v52 = vsel %vm586_vm15, %v568_v7, 0 }
  0xe2   : > { %887 = vmatpush3.bf16.msra.mxu1 %v588_v52 }
  0xe5   : > { %889 = vmatmul.mubr.msk.bf16.vlgmr.msra.gmra.mxu1 %vm579_vm0, %v968_v60 }
  0xec   : > { %v976_v31 = vpop.eup %975 }
  0xed   : > { %v488_v32 = vmul.f32 %v976_v31, %v485_v19  ;;  %v978_v38 = vpop.eup %977 }
  0xee   : > { %v980_v39 = vpop.eup %979  ;;  %v468_v41 = vsel %vm1215_vm5, %v978_v38, 0.0  ;;  %v467_v49 = vsel %vm1210_vm4, %v978_v38, 0.0 }
  0xef   : > { %v490_v34 = vsel %vm489_vm10, %v485_v19, %v488_v32  ;;  %v437_v42 = vsel %vm1199_vm3, %v980_v39, 0.0  ;;  %v471_v43 = vadd.f32 %v980_v39, %v978_v38  ;;  %v436_v50 = vsel %vm1194_vm2, %v980_v39, 0.0 }
  0xf0   : > { %v493_v36 = vsel %vm491_vm11, %v492_v33, %v490_v34  ;;  %v470_v45 = vadd.f32 %v468_v41, %v437_v42  ;;  %v469_v53 = vadd.f32 %v467_v49, %v436_v50  ;;  %vm649_vm2 = vcmask 80896  }
  0xf1   : > { %v494_v37 = vadd.f32 1e-08, %v493_v36  ;;  %vm656_vm3 = vcmask 1044480  }
  0xf3   : > { %981 = vrcp.f32 %v494_v37 }
 0x100   : > { %v982_v44 = vpop.eup %981 }
 0x101   : > { %v499_v46 = vsel %vm497_vm12, %v982_v44, 0.0  ;;  %v502_v47 = vadd.f32 %v982_v44, %v471_v43  ;;  %v498_v51 = vsel %vm496_vm13, %v982_v44, 0.0 }
 0x102   : > { %v501_v48 = vadd.f32 %v499_v46, %v470_v45  ;;  %v500_v54 = vadd.f32 %v498_v51, %v469_v53 }
 0x103   : > { %983 = vrcp.f32 %v502_v47 }
 0x110   : > { %v984_v55 = vpop.eup %983 }
 0x111   : > { %v504_v56 = vmul.f32 %v984_v55, %v500_v54  ;;  %v505_v57 = vmul.f32 %v984_v55, %v501_v48 }
 0x113   : > { %v506_v35 = vpack.c.bf16 %v505_v57, %v504_v56 }
 0x115   : > { %881 = vmatpush3.bf16.msra.mxu0 %v506_v35 }
 0x118   : > { %883 = vmatmul.mubr.msk.bf16.vlgmr.msra.gmra.mxu0 %vm514_vm14, %v966_v58 }
 0x119   : > { %894 = vmatprep.mubr.msk.bf16.mxu0 %vm649_vm2, %v969_v61 }
 0x1a5   : > { %v890_v5 = vpop.f32.mrf.mxu1 }
 0x1a7   : > { %v624_v6 = vpop.f32.mrf.mxu1 }
 0x1a9   : > { %v891_v11 = vpop.f32.mrf.mxu1 }
 0x1ab   : > { %v627_v15 = vpop.f32.mrf.mxu1 }
 0x1d8   : > { %v552_v62 = vpop.f32.mrf.mxu0 }
 0x1da   : > { %v884_v63 = vpop.f32.mrf.mxu0 }
 0x1dc   : > { %v555_v0 = vpop.f32.mrf.mxu0 }
 0x1dd   : > { %v563_v1 = vpack.c.bf16 %v555_v0, %v552_v62 }
 0x1de   : > { %v885_v2 = vpop.f32.mrf.mxu0 }
 0x1df   : > { %v658_v3 = vsel %vm656_vm3, %v563_v1, 0  ;;  %899 = vmatprep.subr.msk.bf16.mxu0 %vm656_vm3, %v563_v1 }
 0x1e0   : > { %893 = vmatpush3.bf16.msra.mxu0 %v658_v3 }
 0x1e3   : > { %895 = vmatmul.mubr.msk.bf16.vlgmr.msra.gmra.mxu0 %vm649_vm2, %v970_v4 }
 0x2a3   : > { %v896_v8 = vpop.f32.mrf.mxu0 }
 0x2a4   : > { %v703_v9 = vadd.f32 %v896_v8, %v890_v5 }
 0x2a5   : > { %v694_v10 = vpop.f32.mrf.mxu0 }
 0x2a6   : > { %711 = vst.msk [vmem:[%s315_s30 + $0x10] sm:$0xff] %vm411_vm1, %v703_v9  ;;  %v695_v12 = vadd.f32 %v694_v10, %v624_v6 }
 0x2a7   : > { %v897_v13 = vpop.f32.mrf.mxu0 }
 0x2a8   : > { %709 = vst.msk [vmem:[%s315_s30] sm:$0xff] %vm411_vm1, %v695_v12  ;;  %v706_v14 = vadd.f32 %v897_v13, %v891_v11 }
 0x2a9   : > { %v697_v16 = vpop.f32.mrf.mxu0 }
 0x2aa   : > { %712 = vst.msk [vmem:[%s315_s30 + $0x18] sm:$0xff] %vm411_vm1, %v706_v14  ;;  %v698_v17 = vadd.f32 %v697_v16, %v627_v15 }
 0x2ac   : > { %710 = vst.msk [vmem:[%s315_s30 + $0x8] sm:$0xff] %vm411_vm1, %v698_v17 }
 0x2ad   : > { %998 = shalt.err (!%p995_p5)
}
 0x2ae   : > { %s999_s16 = scalar_lea.hbm %s1263_s15, 512  ;;  %s1003_s28 = scalar_lea.hbm %s1317_s6, 1024 }
 0x2af   : > { %p1000_p6 = scmp.ne.s32.totalorder %s1263_s15, %s999_s16  ;;  %p1004_p10 = scmp.lt.s32.totalorder %s1263_s15, %s1317_s6 }
 0x2b0   : > { %p1005_p11 = scmp.lt.s32.totalorder %s1003_s28, %s999_s16 }
 0x2b1   : > { %p1001_p7 = pnand %p1000_p6, %p1146_p4 }
 0x2b2   : > { %p1006_p12 = por %p1005_p11, %p1004_p10 }
 0x2b3   : > { %p1002_p9 = pneg %p1001_p7 }
 0x2b5   : > { %p1007_p13 = pnand %p1006_p12, %p1002_p9 }
 0x2b7   : > { %1010 = shalt.err (!%p1007_p13)
}
 0x2b8   : > { %s1069_s13 = smov 128   ;;  %s1070_s14 = smov 8  }
 0x2b9   : > { %900 = dma.vmem_to_hbm [thread:$0]  (%p1146_p4), %s1257_s8, 512, %s1263_s15, %s1266_s24, %s1069_s13, %s1069_s13, %s1070_s14  }
 0x2ba PF: > { %p906_p0 = scmp.ge.s32.totalorder %s1061_s26, 2  ;;  %s743_s17 = sand.u32 1, %s1041_s21  }
 0x2bb   : > { %s744_s18 = scalar_lea.sflag [#allocation3], %s743_s17 }
 0x2bc   : > { %p903_p1 = pnand %p906_p0, %p1153_p8 }
 0x2be   : > { %p904_p2 = pneg %p903_p1 }
 0x2c0   : > { %1036 = dma.done.wait (%p904_p2), %s744_s18, 512  }
 0x2c1   : > { %1038 = vsyncadd (%p904_p2), %s744_s18, 4294966784  ;;  %s19_s26 = sadd.s32 1, %s1061_s26   ;;  %s1328_s21 = smov %s1045_s22 }
 0x2c2   : > { %p16_p3 = scmp.ge.s32.totalorder %s19_s26, 4   ;;  %s1329_s22 = smov %s1049_s23 }
 0x2c3   : > { %s1330_s23 = smov %s1159_s10  ;;  %s1331_s24 = smov %s1057_s25 }
 0x2c4   : > { %s1332_s25 = smov %s1334_s29  ;;  %18 = sbr.rel (!%p16_p3) target bundleno = 4 (0x4), region = 88 }
 0x2c9   :  { %749 = vsyncpa [#allocation3], 1 }
 0x2ca   :  { %751 = vsyncpa [#allocation3 + $0x1], 1 }

</bundles_post_ra>
